<compile_context>
chip_gen: v5e
topology: v5e:2x2
jax: 0.10.0
libtpu: 0.0.40
codegen_flags: <defaults>
</compile_context>

<pallas_src>
import functools

import jax
import jax.numpy as jnp
from jax.experimental import pallas as pl
from jax.experimental.pallas import tpu as pltpu


# ----------------------------- config ----------------------------------------
class Config:
    d_model = 32
    num_heads = 2
    q_lora_rank = 16
    kv_lora_rank = 16
    qk_rope_head_dim = 8
    qk_nope_head_dim = 16
    v_head_dim = 16
    max_seq_len = 16
    rope_theta = 10000.0
    rms_norm_eps = 1e-6


def _round_up(x, m):
    return (x + m - 1) // m * m


def _pick_tile(dim, tile):
    """Return (block, padded_dim). If dim fits in one tile use the full dim
    (Pallas allows block == full array dim even if not (8,128)-aligned)."""
    if dim <= tile:
        return dim, dim
    return tile, _round_up(dim, tile)


@functools.lru_cache(maxsize=None)
def _vmem_limit_bytes():
    """Generation-aware scoped-VMEM limit: ~75% of physical VMEM
    (~96 MiB on 128 MiB v5e/v6e, ~48 MiB on 64 MiB v7x)."""
    cap = 64 * 1024 * 1024  # conservative fallback (v7x-sized)
    try:
        info = pltpu.get_tpu_info()
        cap = int(getattr(info, "vmem_capacity_bytes", cap) or cap)
    except Exception:
        pass
    return max(32 * 1024 * 1024, (cap * 3) // 4)


def _linear_tiles():
    # Bigger tiles when 128 MiB VMEM is available (v5e/v6e); conservative on v7x.
    if _vmem_limit_bytes() >= 80 * 1024 * 1024:
        return 512, 512, 1024
    return 256, 256, 512


# ----------------------------- tiled linear (x @ W) --------------------------
def _matmul_kernel(x_ref, w_ref, o_ref, acc_ref):
    k = pl.program_id(2)

    @pl.when(k == 0)
    def _():
        acc_ref[...] = jnp.zeros_like(acc_ref)

    # x: (tm, tk) @ w: (tk, tn) -- weights pre-transposed to (K, N) so the MXU
    # consumes them without a per-tile relayout.
    acc_ref[...] += jnp.dot(x_ref[...], w_ref[...],
                            preferred_element_type=jnp.float32)

    # cast + writeback only on the last K step (saves a cast/store per K iter)
    @pl.when(k == pl.num_programs(2) - 1)
    def _():
        o_ref[...] = acc_ref[...].astype(o_ref.dtype)


def linear_pallas(x, w, out_dtype=None, *, tm=None, tn=None, tk=None):
    """x: (M, K), w: (K, N) (pre-transposed) -> x @ w : (M, N), f32 accumulation."""
    if out_dtype is None:
        out_dtype = x.dtype
    dtm, dtn, dtk = _linear_tiles()
    tm = tm or dtm
    tn = tn or dtn
    tk = tk or dtk
    M, K = x.shape
    K2, N = w.shape
    assert K == K2
    btm, Mp = _pick_tile(M, tm)
    btn, Np = _pick_tile(N, tn)
    btk, Kp = _pick_tile(K, tk)
    xp = x if (Mp, Kp) == (M, K) else jnp.pad(x, ((0, Mp - M), (0, Kp - K)))
    wp = w if (Kp, Np) == (K, N) else jnp.pad(w, ((0, Kp - K), (0, Np - N)))
    grid = (Mp // btm, Np // btn, Kp // btk)

    flops = 2 * Mp * Np * Kp
    bytes_accessed = int(xp.size * xp.dtype.itemsize + wp.size * wp.dtype.itemsize
                         + Mp * Np * jnp.dtype(out_dtype).itemsize)

    out = pl.pallas_call(
        _matmul_kernel,
        out_shape=jax.ShapeDtypeStruct((Mp, Np), out_dtype),
        grid=grid,
        in_specs=[
            pl.BlockSpec((btm, btk), lambda i, j, k: (i, k)),
            pl.BlockSpec((btk, btn), lambda i, j, k: (k, j)),
        ],
        out_specs=pl.BlockSpec((btm, btn), lambda i, j, k: (i, j)),
        scratch_shapes=[pltpu.VMEM((btm, btn), jnp.float32)],
        compiler_params=pltpu.CompilerParams(
            dimension_semantics=("parallel", "parallel", "arbitrary"),
            vmem_limit_bytes=_vmem_limit_bytes()),
        cost_estimate=pl.CostEstimate(
            flops=int(flops), transcendentals=0, bytes_accessed=bytes_accessed),
    )(xp, wp)
    if (Mp, Np) != (M, N):
        out = out[:M, :N]
    return out


# --------------------- fused down-projection + RMSNorm -----------------------
def _proj_rmsnorm_kernel(x_ref, w_ref, g_ref, o_ref, acc_ref, *, eps, norm_dim):
    k = pl.program_id(1)

    @pl.when(k == 0)
    def _():
        acc_ref[...] = jnp.zeros_like(acc_ref)

    acc_ref[...] += jnp.dot(x_ref[...], w_ref[...],
                            preferred_element_type=jnp.float32)

    @pl.when(k == pl.num_programs(1) - 1)
    def _():
        y = acc_ref[...]                                      # (tm, N) f32
        lane = jax.lax.broadcasted_iota(jnp.int32, y.shape, 1)
        in_norm = lane < norm_dim
        var = jnp.sum(jnp.where(in_norm, y * y, 0.0), axis=-1,
                      keepdims=True) / norm_dim
        normed = y * jax.lax.rsqrt(var + eps) * g_ref[...]
        o_ref[...] = jnp.where(in_norm, normed, y).astype(o_ref.dtype)


def proj_rmsnorm_pallas(x, w, gamma_full, eps, norm_dim, out_dtype=None, *,
                        tm=None, tk=None):
    """y = x @ w (w is (K, N)); RMSNorm(gamma) on y[:, :norm_dim], remaining
    columns (MQA rope part) pass through unchanged."""
    if out_dtype is None:
        out_dtype = x.dtype
    dtm, _, dtk = _linear_tiles()
    tm = tm or dtm
    tk = tk or dtk
    M, K = x.shape
    K2, N = w.shape
    assert K == K2 and gamma_full.shape == (1, N)
    btm, Mp = _pick_tile(M, tm)
    btk, Kp = _pick_tile(K, tk)
    xp = x if (Mp, Kp) == (M, K) else jnp.pad(x, ((0, Mp - M), (0, Kp - K)))
    wp = w if Kp == K else jnp.pad(w, ((0, Kp - K), (0, 0)))
    grid = (Mp // btm, Kp // btk)

    flops = 2 * Mp * N * Kp
    bytes_accessed = int(xp.size * xp.dtype.itemsize + wp.size * wp.dtype.itemsize
                         + Mp * N * jnp.dtype(out_dtype).itemsize)

    out = pl.pallas_call(
        functools.partial(_proj_rmsnorm_kernel, eps=eps, norm_dim=norm_dim),
        out_shape=jax.ShapeDtypeStruct((Mp, N), out_dtype),
        grid=grid,
        in_specs=[
            pl.BlockSpec((btm, btk), lambda i, k: (i, k)),
            pl.BlockSpec((btk, N), lambda i, k: (k, 0)),
            pl.BlockSpec((1, N), lambda i, k: (0, 0)),
        ],
        out_specs=pl.BlockSpec((btm, N), lambda i, k: (i, 0)),
        scratch_shapes=[pltpu.VMEM((btm, N), jnp.float32)],
        compiler_params=pltpu.CompilerParams(
            dimension_semantics=("parallel", "arbitrary"),
            vmem_limit_bytes=_vmem_limit_bytes()),
        cost_estimate=pl.CostEstimate(
            flops=int(flops), transcendentals=int(Mp),
            bytes_accessed=bytes_accessed),
    )(xp, wp, gamma_full)
    return out if Mp == M else out[:M]


# --------------------- head-tiled flash MLA attention ------------------------
def _mla_attention_kernel(q_nope_ref, q_pe_ref, kv_ref, k_pe_ref, o_ref,
                          m_scr, l_scr, acc_scr, *, dn, tq, tk, exact_recip):
    qi = pl.program_id(2)
    ki = pl.program_id(3)

    @pl.when(ki == 0)
    def _init():
        m_scr[...] = jnp.full_like(m_scr, -jnp.inf)
        l_scr[...] = jnp.zeros_like(l_scr)
        acc_scr[...] = jnp.zeros_like(acc_scr)

    # Causal tile skipping: kv tiles fully above the diagonal do no work.
    @pl.when(ki * tk <= qi * tq + (tq - 1))
    def _compute():
        q_nope = q_nope_ref[0]                       # (Th, tq, Dn)
        q_pe = q_pe_ref[0]                           # (Th, tq, Dr)
        kv = kv_ref[0]                               # (Th, tk, Dn+Dv) packed
        k_nope = kv[..., :dn]                        # (Th, tk, Dn)
        v = kv[..., dn:]                             # (Th, tk, Dv)
        k_pe = k_pe_ref[0]                           # (tk, Dr)  MQA-shared
        th = q_nope.shape[0]
        dr = q_pe.shape[-1]

        # per-head nope scores (softmax scale already folded into q_b weights)
        s = jax.lax.dot_general(
            q_nope, k_nope, (((2,), (2,)), ((0,), (0,))),
            preferred_element_type=jnp.float32)                   # (Th, tq, tk)
        # MQA-shared rope scores as ONE flat (Th*tq, Dr) x (tk, Dr)^T matmul
        s_pe = jax.lax.dot_general(
            q_pe.reshape(th * tq, dr), k_pe, (((1,), (1,)), ((), ())),
            preferred_element_type=jnp.float32)                   # (Th*tq, tk)
        s = s + s_pe.reshape(th, tq, tk)

        # in-kernel causal mask from absolute positions (no HBM mask tensor);
        # padded tail kv positions are also masked for real query rows.
        q_pos = qi * tq + jax.lax.broadcasted_iota(jnp.int32, (tq, tk), 0)
        k_pos = ki * tk + jax.lax.broadcasted_iota(jnp.int32, (tq, tk), 1)
        s = jnp.where((k_pos <= q_pos)[None], s, -jnp.inf)

        # online softmax (f32)
        m_prev = m_scr[...]
        m_new = jnp.maximum(m_prev, jnp.max(s, axis=-1, keepdims=True))
        alpha = jnp.exp(m_prev - m_new)
        p = jnp.exp(s - m_new)
        l_scr[...] = alpha * l_scr[...] + jnp.sum(p, axis=-1, keepdims=True)
        acc_scr[...] = alpha * acc_scr[...] + jax.lax.dot_general(
            p.astype(v.dtype), v, (((2,), (1,)), ((0,), (0,))),
            preferred_element_type=jnp.float32)
        m_scr[...] = m_new

    @pl.when(ki == pl.num_programs(3) - 1)
    def _finalize():
        inv_l = pl.reciprocal(l_scr[...], approx=not exact_recip)
        o_ref[0] = (acc_scr[...] * inv_l).astype(o_ref.dtype)


def mla_attention_pallas(q_nope, q_pe, kv, k_pe, *, out_dtype=None,
                         exact_recip=False):
    """q_nope: (B,H,S,Dn); q_pe: (B,H,S,Dr) post-RoPE; kv: (B,H,S,Dn+Dv) packed
    [k_nope | v]; k_pe: (B,S,Dr) post-RoPE MQA-shared. Returns (B,H,S,Dv).
    Causal masking is generated in-kernel (matches the module's flash path)."""
    if out_dtype is None:
        out_dtype = q_nope.dtype
    B, H, S, dn = q_nope.shape
    dr = q_pe.shape[-1]
    dnv = kv.shape[-1]
    dv = dnv - dn

    # head tiling keeps per-step VMEM bounded at production head counts (v7x)
    if H <= 16:
        th = H
    else:
        th = next(d for d in (16, 8, 4, 2, 1) if H % d == 0)

    # pad S to (8,128)-friendly tiles; never one unaligned mega-block
    if S % 128 == 0:
        sp, tile = S, 128
    elif S <= 128:
        sp = _round_up(S, 8)
        tile = sp
    else:
        sp, tile = _round_up(S, 128), 128
    tq = tk = tile
    if sp != S:
        pad4 = ((0, 0), (0, 0), (0, sp - S), (0, 0))
        q_nope = jnp.pad(q_nope, pad4)
        q_pe = jnp.pad(q_pe, pad4)
        kv = jnp.pad(kv, pad4)
        k_pe = jnp.pad(k_pe, ((0, 0), (0, sp - S), (0, 0)))

    grid = (B, H // th, sp // tq, sp // tk)

    flops = B * H * sp * sp * (dn + dr + dv)   # ~ 2*full/2 (causal skipping)
    bytes_accessed = int(
        sum(int(a.size) * a.dtype.itemsize for a in (q_nope, q_pe, kv, k_pe))
        + B * H * sp * dv * jnp.dtype(out_dtype).itemsize)

    out = pl.pallas_call(
        functools.partial(_mla_attention_kernel, dn=dn, tq=tq, tk=tk,
                          exact_recip=exact_recip),
        out_shape=jax.ShapeDtypeStruct((B, H, sp, dv), out_dtype),
        grid=grid,
        in_specs=[
            pl.BlockSpec((1, th, tq, dn), lambda b, h, qi, ki: (b, h, qi, 0)),
            pl.BlockSpec((1, th, tq, dr), lambda b, h, qi, ki: (b, h, qi, 0)),
            pl.BlockSpec((1, th, tk, dnv), lambda b, h, qi, ki: (b, h, ki, 0)),
            pl.BlockSpec((1, tk, dr), lambda b, h, qi, ki: (b, ki, 0)),
        ],
        out_specs=pl.BlockSpec((1, th, tq, dv),
                               lambda b, h, qi, ki: (b, h, qi, 0)),
        scratch_shapes=[
            pltpu.VMEM((th, tq, 1), jnp.float32),   # m
            pltpu.VMEM((th, tq, 1), jnp.float32),   # l
            pltpu.VMEM((th, tq, dv), jnp.float32),  # acc
        ],
        compiler_params=pltpu.CompilerParams(
            dimension_semantics=("parallel", "parallel", "parallel",
                                 "arbitrary"),
            vmem_limit_bytes=_vmem_limit_bytes()),
        cost_estimate=pl.CostEstimate(
            flops=int(flops), transcendentals=int(B * H * sp * sp) // 2,
            bytes_accessed=bytes_accessed),
    )(q_nope, q_pe, kv, k_pe)
    if sp != S:
        out = out[:, :, :S]
    return out


# ----------------------------- JAX glue ---------------------------------------
def make_rotary_cache(dim, max_pos, base, dtype=jnp.float32):
    inv_freq = 1.0 / (base ** (jnp.arange(0, dim, 2, dtype=jnp.float32) / dim))
    t = jnp.arange(max_pos, dtype=jnp.float32)
    freqs = jnp.outer(t, inv_freq)
    emb = jnp.concatenate([freqs, freqs], axis=-1)
    return jnp.cos(emb).astype(dtype), jnp.sin(emb).astype(dtype)


def rotate_half(x):
    half = x.shape[-1] // 2
    return jnp.concatenate([-x[..., half:], x[..., :half]], axis=-1)


def apply_rope(x, cos, sin):
    return x * cos + rotate_half(x) * sin


def init_params(cfg, key):
    """PyTorch nn.Linear layout: (out_features, in_features)."""
    ks = jax.random.split(key, 5)
    s = 0.05
    qhd = cfg.qk_nope_head_dim + cfg.qk_rope_head_dim
    return {
        "q_a_proj": jax.random.normal(ks[0], (cfg.q_lora_rank, cfg.d_model),
                                      jnp.float32) * s,
        "q_a_ln": jnp.ones((cfg.q_lora_rank,), jnp.float32),
        "q_b_proj": jax.random.normal(ks[1], (cfg.num_heads * qhd,
                                              cfg.q_lora_rank), jnp.float32) * s,
        "kv_a_proj": jax.random.normal(
            ks[2], (cfg.kv_lora_rank + cfg.qk_rope_head_dim, cfg.d_model),
            jnp.float32) * s,
        "kv_a_ln": jnp.ones((cfg.kv_lora_rank,), jnp.float32),
        "kv_b_proj": jax.random.normal(
            ks[3], (cfg.num_heads * (cfg.qk_nope_head_dim + cfg.v_head_dim),
                    cfg.kv_lora_rank), jnp.float32) * s,
        "o_proj": jax.random.normal(
            ks[4], (cfg.d_model, cfg.num_heads * cfg.v_head_dim),
            jnp.float32) * s,
    }


def prepare_params(params, cfg, compute_dtype):
    """One-time weight prep (outside the forward): transpose PyTorch (out,in)
    -> (in,out) so kernels contract the standard (K,N) layout, fold the
    softmax scale into q_b, prebuild RMSNorm gamma rows, cast to compute dtype."""
    scale = (cfg.qk_nope_head_dim + cfg.qk_rope_head_dim) ** (-0.5)
    p = {
        "q_a_proj": params["q_a_proj"].T.astype(compute_dtype),
        "q_b_proj": (params["q_b_proj"] * scale).T.astype(compute_dtype),
        "kv_a_proj": params["kv_a_proj"].T.astype(compute_dtype),
        "kv_b_proj": params["kv_b_proj"].T.astype(compute_dtype),
        "o_proj": params["o_proj"].T.astype(compute_dtype),
        "q_a_gamma": params["q_a_ln"].astype(jnp.float32).reshape(1, -1),
    }
    n_kv = cfg.kv_lora_rank + cfg.qk_rope_head_dim
    g = jnp.ones((1, n_kv), jnp.float32)
    p["kv_a_gamma"] = g.at[0, :cfg.kv_lora_rank].set(
        params["kv_a_ln"].astype(jnp.float32))
    return p


# ------------------------- pure-JAX reference ops ----------------------------
def _linear_reference(x, w, out_dtype=None):
    if out_dtype is None:
        out_dtype = x.dtype
    return jnp.dot(x, w, preferred_element_type=jnp.float32).astype(out_dtype)


def _proj_rmsnorm_reference(x, w, gamma_full, eps, norm_dim, out_dtype=None):
    if out_dtype is None:
        out_dtype = x.dtype
    y = jnp.dot(x, w, preferred_element_type=jnp.float32)
    yn = y[:, :norm_dim]
    var = jnp.mean(yn * yn, axis=-1, keepdims=True)
    yn = yn * jax.lax.rsqrt(var + eps) * gamma_full[0, :norm_dim]
    return jnp.concatenate([yn, y[:, norm_dim:]], axis=-1).astype(out_dtype)


def _attention_reference(q_nope, q_pe, kv, k_pe, mask, dn, cd):
    k_nope = kv[..., :dn]
    v = kv[..., dn:]
    s = jnp.einsum("bhqd,bhkd->bhqk", q_nope, k_nope,
                   preferred_element_type=jnp.float32)
    s = s + jnp.einsum("bhqr,bkr->bhqk", q_pe, k_pe,
                       preferred_element_type=jnp.float32)
    s = s + mask.astype(jnp.float32)
    p = jax.nn.softmax(s, axis=-1)
    o = jnp.einsum("bhqk,bhkd->bhqd", p.astype(v.dtype), v,
                   preferred_element_type=jnp.float32)
    return o.astype(cd)


# ----------------------------- forward -----------------------------------------
def deepseek_v3_attention_forward(params, hidden_states, attention_mask,
                                  position_ids, cfg, rope_cache, *,
                                  compute_dtype=jnp.bfloat16, use_pallas=True):
    # NOTE: the Pallas path generates the causal mask in-kernel (matching the
    # module's flash-attention path); attention_mask is only consumed by the
    # pure-JAX reference path and is assumed to be the additive causal mask.
    B, S, _ = hidden_states.shape
    H = cfg.num_heads
    dn, dr, dv = cfg.qk_nope_head_dim, cfg.qk_rope_head_dim, cfg.v_head_dim
    dq = dn + dr
    eps = cfg.rms_norm_eps
    cd = compute_dtype

    if use_pallas:
        linear = linear_pallas
        proj_norm = proj_rmsnorm_pallas
    else:
        linear = _linear_reference
        proj_norm = _proj_rmsnorm_reference

    h2 = hidden_states.reshape(B * S, cfg.d_model).astype(cd)

    # ---- q path: down-proj fused with RMSNorm, then up-proj (scale folded) --
    q_a = proj_norm(h2, params["q_a_proj"], params["q_a_gamma"], eps,
                    cfg.q_lora_rank, out_dtype=cd)
    q = linear(q_a, params["q_b_proj"], out_dtype=cd)
    q = q.reshape(B, S, H, dq).transpose(0, 2, 1, 3)          # (B,H,S,Dq)
    q_nope = q[..., :dn]
    q_pe = q[..., dn:]

    # ---- kv path: joint down-proj (+ MQA rope cols) fused with RMSNorm ------
    ckv = proj_norm(h2, params["kv_a_proj"], params["kv_a_gamma"], eps,
                    cfg.kv_lora_rank, out_dtype=cd)
    k_pe = ckv[:, cfg.kv_lora_rank:].reshape(B, S, dr)          # MQA-shared
    kv = linear(ckv[:, :cfg.kv_lora_rank], params["kv_b_proj"], out_dtype=cd)
    kv = kv.reshape(B, S, H, dn + dv).transpose(0, 2, 1, 3)     # (B,H,S,Dn+Dv)

    # ---- RoPE (tiny Dr-wide elementwise; cos/sin cache precomputed once) ----
    cos_c, sin_c = rope_cache
    pos = position_ids if position_ids.ndim == 2 else position_ids[None, :]
    cos = cos_c[pos][:, None]                                   # (b_or_1,1,S,Dr)
    sin = sin_c[pos][:, None]
    q_pe = apply_rope(q_pe.astype(jnp.float32), cos, sin).astype(cd)
    k_pe = apply_rope(k_pe.astype(jnp.float32)[:, None], cos, sin)[:, 0].astype(cd)

    if use_pallas:
        attn = mla_attention_pallas(q_nope, q_pe, kv, k_pe, out_dtype=cd,
                                    exact_recip=(cd == jnp.float32))
    else:
        attn = _attention_reference(q_nope, q_pe, kv, k_pe,
                                    attention_mask, dn, cd)

    attn = attn.transpose(0, 2, 1, 3).reshape(B * S, H * dv)
    out = linear(attn, params["o_proj"], out_dtype=hidden_states.dtype)
    return out.reshape(B, S, cfg.d_model)


# ----------------------------- main -------------------------------------------
if __name__ == "__main__":
    cfg = Config()
    bsz, q_len = 2, 8

    key = jax.random.PRNGKey(0)
    k_param, k_x = jax.random.split(key)
    raw_params = init_params(cfg, k_param)

    hidden_states = jax.random.normal(k_x, (bsz, q_len, cfg.d_model), jnp.float32)
    position_ids = jnp.arange(q_len, dtype=jnp.int32)

    # causal additive mask (only used by the pure-JAX reference path)
    causal = jnp.tril(jnp.ones((q_len, q_len), jnp.bool_))
    attention_mask = jnp.where(causal, 0.0, -1e9).astype(jnp.float32)
    attention_mask = jnp.broadcast_to(attention_mask, (bsz, 1, q_len, q_len))

    # rotary cos/sin cache precomputed once (hoisted out of the forward)
    rope_cache = make_rotary_cache(cfg.qk_rope_head_dim, cfg.max_seq_len,
                                   cfg.rope_theta)

    # run once in exact f32 (original module semantics) and once in bf16
    # MXU-compute mode; both are checked against a matching pure-JAX reference.
    for cd, tol in ((jnp.float32, 1e-3), (jnp.bfloat16, 2e-2)):
        params = prepare_params(raw_params, cfg, cd)
        out = deepseek_v3_attention_forward(
            params, hidden_states, attention_mask, position_ids, cfg,
            rope_cache, compute_dtype=cd, use_pallas=True)
        out = jax.block_until_ready(out)
        ref = deepseek_v3_attention_forward(
            params, hidden_states, attention_mask, position_ids, cfg,
            rope_cache, compute_dtype=cd, use_pallas=False)
        ref = jax.block_until_ready(ref)
        assert out.shape == (bsz, q_len, cfg.d_model)
        err = float(jnp.max(jnp.abs(out.astype(jnp.float32)
                                    - ref.astype(jnp.float32))))
        assert err < tol, (str(cd), err)

    print("KERNEL_OK")
</pallas_src>

<mosaic_0001>
module attributes {stable_mosaic.version = 11 : i64} {
  func.func @_proj_rmsnorm_kernel(%arg0: i32, %arg1: i32, %arg2: memref<16x32xf32, #tpu.memory_space<vmem>>, %arg3: memref<32x16xf32, #tpu.memory_space<vmem>>, %arg4: memref<1x16xf32, #tpu.memory_space<vmem>>, %arg5: memref<16x16xf32, #tpu.memory_space<vmem>>, %arg6: memref<16x16xf32, #tpu.memory_space<vmem>>) attributes {dimension_semantics = [#tpu.dimension_semantics<parallel>, #tpu.dimension_semantics<arbitrary>], iteration_bounds = array<i64: 1, 1>, scalar_prefetch = 0 : i64, scratch_operands = 1 : i64, tpu.core_type = #tpu.core_type<tc>, window_params = [{transform_indices = @transform_0, window_bounds = array<i64: 16, 32>}, {transform_indices = @transform_1, window_bounds = array<i64: 32, 16>}, {pipeline_mode = #tpu.pipeline_mode<synchronous>, transform_indices = @transform_2, window_bounds = array<i64: 1, 16>}, {transform_indices = @transform_3, window_bounds = array<i64: 16, 16>}]} {
    %c0_i32 = arith.constant 0 : i32
    %0 = arith.cmpi eq, %arg1, %c0_i32 : i32
    %1 = arith.extui %0 : i1 to i32
    %c0_i32_0 = arith.constant 0 : i32
    %2 = arith.cmpi ne, %1, %c0_i32_0 : i32
    scf.if %2 {
      %cst_10 = arith.constant 0.000000e+00 : f32
      %12 = vector.broadcast %cst_10 : f32 to vector<16x16xf32>
      %c0_11 = arith.constant 0 : index
      %c0_12 = arith.constant 0 : index
      %13 = vector.load %arg6[%c0_11, %c0_12] : memref<16x16xf32, #tpu.memory_space<vmem>>, vector<16x16xf32>
      tpu.vector_store %arg6[%c0_11, %c0_12], %12 {strides = array<i32>} : memref<16x16xf32, #tpu.memory_space<vmem>>, vector<16x16xf32>,
    } else {
    }
    %c0 = arith.constant 0 : index
    %c0_1 = arith.constant 0 : index
    %3 = vector.load %arg6[%c0, %c0_1] : memref<16x16xf32, #tpu.memory_space<vmem>>, vector<16x16xf32>
    %c0_2 = arith.constant 0 : index
    %c0_3 = arith.constant 0 : index
    %4 = vector.load %arg2[%c0_2, %c0_3] : memref<16x32xf32, #tpu.memory_space<vmem>>, vector<16x32xf32>
    %c0_4 = arith.constant 0 : index
    %c0_5 = arith.constant 0 : index
    %5 = vector.load %arg3[%c0_4, %c0_5] : memref<32x16xf32, #tpu.memory_space<vmem>>, vector<32x16xf32>
    %cst = arith.constant dense<0.000000e+00> : vector<16x16xf32>
    %6 = tpu.matmul %4, %5, %cst {dimension_numbers = #tpu.dot_dimension_numbers<[1], [0], [0], [1], [0, 0, 1, 1], [], []>} : vector<16x32xf32>, vector<32x16xf32>, vector<16x16xf32> -> vector<16x16xf32>
    %7 = arith.addf %3, %6 : vector<16x16xf32>
    %c0_6 = arith.constant 0 : index
    %c0_7 = arith.constant 0 : index
    %8 = vector.load %arg6[%c0_6, %c0_7] : memref<16x16xf32, #tpu.memory_space<vmem>>, vector<16x16xf32>
    tpu.vector_store %arg6[%c0_6, %c0_7], %7 {strides = array<i32>} : memref<16x16xf32, #tpu.memory_space<vmem>>, vector<16x16xf32>,
    %c0_i32_8 = arith.constant 0 : i32
    %9 = arith.cmpi eq, %arg1, %c0_i32_8 : i32
    %10 = arith.extui %9 : i1 to i32
    %c0_i32_9 = arith.constant 0 : i32
    %11 = arith.cmpi ne, %10, %c0_i32_9 : i32
    scf.if %11 {
      %c0_10 = arith.constant 0 : index
      %c0_11 = arith.constant 0 : index
      %12 = vector.load %arg6[%c0_10, %c0_11] : memref<16x16xf32, #tpu.memory_space<vmem>>, vector<16x16xf32>
      %13 = tpu.iota {dimensions = array<i32: 1>} : vector<16x16xi32>
      %c16_i32 = arith.constant 16 : i32
      %14 = vector.broadcast %c16_i32 : i32 to vector<16x16xi32>
      %15 = arith.cmpi slt, %13, %14 : vector<16x16xi32>
      %16 = arith.mulf %12, %12 : vector<16x16xf32>
      %cst_12 = arith.constant 0.000000e+00 : f32
      %17 = vector.broadcast %cst_12 : f32 to vector<16x16xf32>
      %18 = arith.select %15, %16, %17 : vector<16x16xi1>, vector<16x16xf32>
      %cst_13 = arith.constant dense<0.000000e+00> : vector<16xf32>
      %19 = vector.multi_reduction <add>, %18, %cst_13 [1] : vector<16x16xf32> to vector<16xf32>
      %20 = vector.shape_cast %19 : vector<16xf32> to vector<16x1xf32>
      %cst_14 = arith.constant 1.600000e+01 : f32
      %21 = vector.broadcast %cst_14 : f32 to vector<16x1xf32>
      %22 = arith.divf %20, %21 : vector<16x1xf32>
      %cst_15 = arith.constant 9.99999997E-7 : f32
      %23 = vector.broadcast %cst_15 : f32 to vector<16x1xf32>
      %24 = arith.addf %22, %23 : vector<16x1xf32>
      %25 = math.rsqrt %24 : vector<16x1xf32>
      %26 = vector.broadcast %25 : vector<16x1xf32> to vector<16x16xf32>
      %27 = arith.mulf %12, %26 : vector<16x16xf32>
      %c0_16 = arith.constant 0 : index
      %c0_17 = arith.constant 0 : index
      %28 = vector.load %arg4[%c0_16, %c0_17] : memref<1x16xf32, #tpu.memory_space<vmem>>, vector<1x16xf32>
      %29 = vector.broadcast %28 : vector<1x16xf32> to vector<16x16xf32>
      %30 = arith.mulf %27, %29 : vector<16x16xf32>
      %31 = arith.select %15, %30, %12 : vector<16x16xi1>, vector<16x16xf32>
      %c0_18 = arith.constant 0 : index
      %c0_19 = arith.constant 0 : index
      %32 = vector.load %arg5[%c0_18, %c0_19] : memref<16x16xf32, #tpu.memory_space<vmem>>, vector<16x16xf32>
      tpu.vector_store %arg5[%c0_18, %c0_19], %31 {strides = array<i32>} : memref<16x16xf32, #tpu.memory_space<vmem>>, vector<16x16xf32>,
    } else {
    }
    return
  }
  func.func @transform_0(%arg0: i32, %arg1: i32) -> (i32, i32) {
    %c0_i32 = arith.constant 0 : i32
    return %arg0, %arg1 : i32, i32
  }
  func.func @transform_1(%arg0: i32, %arg1: i32) -> (i32, i32) {
    %c0_i32 = arith.constant 0 : i32
    %c0_i32_0 = arith.constant 0 : i32
    return %arg1, %c0_i32 : i32, i32
  }
  func.func @transform_2(%arg0: i32, %arg1: i32) -> (i32, i32) {
    %c0_i32 = arith.constant 0 : i32
    %c0_i32_0 = arith.constant 0 : i32
    %c0_i32_1 = arith.constant 0 : i32
    return %c0_i32, %c0_i32_0 : i32, i32
  }
  func.func @transform_3(%arg0: i32, %arg1: i32) -> (i32, i32) {
    %c0_i32 = arith.constant 0 : i32
    %c0_i32_0 = arith.constant 0 : i32
    return %arg0, %c0_i32 : i32, i32
  }
}

</mosaic_0001>

<bundles_post_ra>
// kernel: tpu_custom_call.1
= control target key start
LH: loop header
LB: loop body
LE: loop exit
PB: predicated region body
PF: predicated region fallthrough
CT: control target
= control target key end

     0   :  { %vm19_vm0 = vcmask 130048   ;;  %v188_v2 = vmov 0.0   ;;  %s256_s0 = inlined_call_operand.vmem [shape: f32[16,32], index: 0, kind: input, shape index: {}]   ;;  %s257_s1 = inlined_call_operand.vmem [shape: f32[32,16], index: 1, kind: input, shape index: {}]   ;;  %s258_s2 = inlined_call_operand.vmem [shape: f32[1,16], index: 2, kind: input, shape index: {}]   ;;  %s259_s3 = inlined_call_operand.hbm [shape: f32[16,16], index: 3, kind: output, shape index: {}]  }
   0x1   :  { %v29_v0 = vld [vmem:[%s257_s1 + $0x18] sm:$0xff]  ;;  %v28_v1 = vld [vmem:[%s257_s1 + $0x10] sm:$0xff]  ;;  %20 = vst.msk [vmem:[#allocation2] sm:$0xff] %vm19_vm0, %v188_v2  ;;  %v27_v3 = vld [vmem:[%s257_s1 + $0x8] sm:$0xff] }
   0x2   :  { %49 = vmatpush.msra.mxu0 %v29_v0  ;;  %146 = vmatpush.msra.mxu1 %v29_v0  ;;  %21 = vst.msk [vmem:[#allocation2 + $0x8] sm:$0xff] %vm19_vm0, %v188_v2 }
   0x3   :  { %8 = vsyncpa [#allocation4], 0  ;;  %v26_v4 = vld [vmem:[%s257_s1] sm:$0xff]  ;;  %vm30_vm1 = vcmask 261120   ;;  %v25_v6 = vld [vmem:[%s256_s0 + $0x8] sm:$0xff]  ;;  %v70_v13 = vlaneseq  ;;  %v189_v23 = vmov 16.0  }
   0x4   :  { %50 = vmatpush.msra.mxu0 %v28_v1  ;;  %147 = vmatpush.msra.mxu1 %v28_v1  ;;  %v24_v5 = vld [vmem:[%s256_s0] sm:$0xff]  ;;  %156 = vrcp.f32 %v189_v23  ;;  %s190_s24 = smov [#allocation3]   ;;  %s132_s27 = sshll.u32 %s259_s3, 4  ;;  %s133_s27 = int_to_ptr.hbm [resolvable:$true] %s132_s27 }
   0x5   :  { %v235_v14 = vand.u32 127, %v70_v13  ;;  %v155_v44 = vld [vmem:[%s258_s2] ss:$0 sm:$0xff]  ;;  %s130_s25 = sshll.u32 %s190_s24, 4  ;;  %s191_s28 = smov 128   ;;  %s131_s25 = int_to_ptr.vmem [resolvable:$true] %s130_s25 }
   0x6   :  { %51 = vmatpush.msra.mxu0 %v27_v3  ;;  %148 = vmatpush.msra.mxu1 %v27_v3  ;;  %s192_s29 = smov 8  }
   0x7   :  { %vm72_vm2 = vcmp.lt.s32.totalorder %v235_v14, 16 }
   0x8   :  { %52 = vmatpush.msra.mxu0 %v26_v4  ;;  %149 = vmatpush.msra.mxu1 %v26_v4  ;;  %v22_v7 = vld [vmem:[#allocation2] sm:$0xff] }
   0x9   :  { %144 = vmatmul.msk.f32.vlgmr.msra.gmra.mxu0 %vm30_vm1, %v24_v5  ;;  %145 = vmatmul.msk.f32.vlgmr.msra.gmra.mxu1 %vm30_vm1, %v25_v6  ;;  %v23_v8 = vld [vmem:[#allocation2 + $0x8] sm:$0xff] }
   0xa   :  { %v157_v24 = vpop.eup %156 }
   0xb   :  { %v84_v25 = vmul.f32 16.0, %v157_v24  ;;  %vm88_vm3 = vweird.f32 %v157_v24 }
   0xd   :  { %v85_v26 = vsub.f32 1.0, %v84_v25 }
   0xf   :  { %v86_v27 = vmul.f32 %v157_v24, %v85_v26 }
  0x11   :  { %v87_v28 = vadd.f32 %v157_v24, %v86_v27 }
  0x13   :  { %v89_v29 = vsel %vm88_vm3, %v157_v24, %v87_v28 }
  0x86   :  { %v54_v9 = vpop.f32.mrf.mxu0  ;;  %v57_v10 = vpop.f32.mrf.mxu1 }
  0x87   :  { %v60_v11 = vadd.f32 %v54_v9, %v22_v7  ;;  %v61_v12 = vadd.f32 %v57_v10, %v23_v8 }
  0x89   :  { %63 = vst.msk [vmem:[#allocation2] sm:$0xff] %vm19_vm0, %v60_v11 }
  0x8a   :  { %64 = vst.msk [vmem:[#allocation2 + $0x8] sm:$0xff] %vm19_vm0, %v61_v12 }
  0x90   :  { %v68_v15 = vld [vmem:[#allocation2] sm:$0xff] }
  0x91   :  { %v73_v16 = vmul.f32 %v68_v15, %v68_v15  ;;  %v69_v17 = vld [vmem:[#allocation2 + $0x8] sm:$0xff] }
  0x92   :  { %v74_v19 = vmul.f32 %v69_v17, %v69_v17 }
  0x93   :  { %v75_v18 = vsel %vm72_vm2, %v73_v16, 0.0 }
  0x94   :  { %v77_v20 = vsel %vm19_vm0, %v75_v18, 0.0  ;;  %v76_v21 = vsel %vm72_vm2, %v74_v19, 0.0 }
  0x95   :  { %78 = vadd.xlane.f32.xlu0 %v77_v20  ;;  %v80_v22 = vsel %vm19_vm0, %v76_v21, 0.0 }
  0x9d   :  { %81 = vadd.xlane.f32.xlu0 %v80_v22 }
 0x108   :  { %v79_v30 = vpop.xlane.xlu0 %78 }
 0x109   :  { %v90_v31 = vmul.f32 %v89_v29, %v79_v30 }
 0x10b   :  { %v92_v32 = vadd.f32 1e-06, %v90_v31 }
 0x10d   :  { %158 = vrsqrt.f32 %v92_v32  ;;  %vm100_vm5 = vweird.f32 %v92_v32 }
 0x110   :  { %v82_v33 = vpop.xlane.xlu0 %81 }
 0x111   :  { %v91_v34 = vmul.f32 %v89_v29, %v82_v33 }
 0x113   :  { %v159_v35 = vpop.eup %158  ;;  %v93_v36 = vadd.f32 1e-06, %v91_v34 }
 0x114   :  { %v95_v37 = vmul.f32 %v159_v35, %v92_v32  ;;  %vm101_vm4 = vweird.f32 %v159_v35 }
 0x115   :  { %160 = vrsqrt.f32 %v93_v36  ;;  %vm102_vm6 = vmor %vm100_vm5, %vm101_vm4  ;;  %vm110_vm8 = vweird.f32 %v93_v36 }
 0x116   :  { %v96_v38 = vmul.f32 %v159_v35, %v95_v37 }
 0x118   :  { %v97_v39 = vmul.f32 0.5, %v96_v38 }
 0x11a   :  { %v98_v40 = vsub.f32 1.5, %v97_v39 }
 0x11b   :  { %v161_v41 = vpop.eup %160 }
 0x11c   :  { %v99_v42 = vmul.f32 %v159_v35, %v98_v40  ;;  %v105_v43 = vmul.f32 %v161_v41, %v93_v36  ;;  %vm111_vm7 = vweird.f32 %v161_v41 }
 0x11d   :  { %vm112_vm9 = vmor %vm110_vm8, %vm111_vm7 }
 0x11e   :  { %v103_v45 = vsel %vm102_vm6, %v159_v35, %v99_v42  ;;  %v106_v46 = vmul.f32 %v161_v41, %v105_v43 }
 0x11f   :  { %v114_v47 = vmul.f32 %v103_v45, %v68_v15 }
 0x120   :  { %v107_v48 = vmul.f32 0.5, %v106_v46 }
 0x121   :  { %v120_v49 = vmul.f32 %v155_v44, %v114_v47 }
 0x122   :  { %v108_v50 = vsub.f32 1.5, %v107_v48 }
 0x123   :  { %v122_v51 = vsel %vm72_vm2, %v120_v49, %v68_v15 }
 0x124   :  { %v109_v52 = vmul.f32 %v161_v41, %v108_v50  ;;  %124 = vst.msk [vmem:[#allocation3] sm:$0xff] %vm19_vm0, %v122_v51 }
 0x126   :  { %v113_v53 = vsel %vm112_vm9, %v161_v41, %v109_v52 }
 0x127   :  { %v115_v54 = vmul.f32 %v113_v53, %v69_v17 }
 0x129   :  { %v121_v55 = vmul.f32 %v155_v44, %v115_v54 }
 0x12b   :  { %v123_v56 = vsel %vm72_vm2, %v121_v55, %v69_v17 }
 0x12c   :  { %125 = vst.msk [vmem:[#allocation3 + $0x8] sm:$0xff] %vm19_vm0, %v123_v56 }
 0x12d   :  { %138 = dma.vmem_to_hbm [thread:$0]  %s131_s25, 256, %s133_s27, [#allocation4], %s191_s28, %s191_s28, %s192_s29  }
 0x12e   :  { %186 = dma.done.wait [#allocation4], 256  }
 0x12f   :  { %187 = vsyncadd [#allocation4], 4294967040 }
 0x130   :  { %143 = vsyncpa [#allocation4], 1 }

</bundles_post_ra>
